<compile_context>
chip_gen: v6e
topology: v6e:2x2x1
jax: 0.10.0
libtpu: 0.0.40
codegen_flags: <defaults>
</compile_context>

<pallas_src>
import jax
import jax.numpy as jnp
from jax import lax
from jax.experimental import pallas as pl
from jax.experimental.pallas import tpu as pltpu

MAX_TILE_B = 128   # bags per grid step (fills the MXU M dimension)
LANE = 128
SUBLANE = 8


def _round_up(x, m):
    return ((x + m - 1) // m) * m


def _embbag_fc_kernel(text_ref, start_ref, end_ref, emb_ref, w_ref, b_ref, out_ref):
    """One grid step: TILE_B bags of EmbeddingBag(mean) + Linear, fully vectorized."""
    tile_b = out_ref.shape[0]
    t_pad = text_ref.shape[0]
    v_pad = emb_ref.shape[0]

    starts = start_ref[...]                               # (TILE_B, 1) int32
    ends = end_ref[...]                                    # (TILE_B, 1) int32
    lens = (ends - starts).astype(jnp.float32)
    inv = jnp.where(lens > 0.0, 1.0 / jnp.maximum(lens, 1.0), 0.0)   # empty bag -> 0

    # Segment-mean matrix over the token axis (VPU iota compares, no loops).
    t_iota = lax.broadcasted_iota(jnp.int32, (tile_b, t_pad), 1)
    in_bag = (t_iota >= starts) & (t_iota < ends)
    seg = jnp.where(in_bag, inv, 0.0)                       # (TILE_B, T_pad) f32

    # One-hot of the token ids over the (padded) vocab axis.
    tok = text_ref[...]                                     # (T_pad, 1) int32
    v_iota = lax.broadcasted_iota(jnp.int32, (t_pad, v_pad), 1)
    onehot = (tok == v_iota).astype(jnp.float32)            # (T_pad, V_pad)

    # Three MXU matmuls: bag/token mean -> embedding gather -> fc.
    bag_voc = jnp.dot(seg, onehot,
                      preferred_element_type=jnp.float32)   # (TILE_B, V_pad)
    embedded = jnp.dot(bag_voc, emb_ref[...],
                       preferred_element_type=jnp.float32)  # (TILE_B, D_pad)
    out_ref[...] = (jnp.dot(embedded, w_ref[...],
                            preferred_element_type=jnp.float32)
                    + b_ref[...]).astype(out_ref.dtype)


def prepare_params(emb_table, fc_w, fc_b):
    """Pad / transpose model parameters ONCE (hoisted out of the forward path)."""
    V, D = emb_table.shape
    C = fc_w.shape[0]
    V_pad = _round_up(V, LANE)
    D_pad = _round_up(D, LANE)
    C_pad = _round_up(C, LANE)

    emb_pad = jnp.zeros((V_pad, D_pad), jnp.float32).at[:V, :D].set(
        emb_table.astype(jnp.float32))
    w_t = jnp.zeros((D_pad, C_pad), jnp.float32).at[:D, :C].set(
        fc_w.T.astype(jnp.float32))
    b_pad = jnp.zeros((1, C_pad), jnp.float32).at[:, :C].set(
        fc_b.astype(jnp.float32))
    return {"emb": emb_pad, "w_t": w_t, "b": b_pad, "num_class": C}


def text_classification_forward(text, offsets, params, *, tile_b=None):
    """EmbeddingBag(mean) + Linear in a single bag-tiled Pallas kernel."""
    emb_pad, w_t, b_pad = params["emb"], params["w_t"], params["b"]
    C = params["num_class"]

    text = text.astype(jnp.int32)
    offsets = offsets.astype(jnp.int32)
    T = text.shape[0]
    B = offsets.shape[0]
    V_pad, D_pad = emb_pad.shape
    C_pad = w_t.shape[1]

    if tile_b is None:
        tile_b = min(MAX_TILE_B, _round_up(B, SUBLANE))
    B_pad = _round_up(B, tile_b)
    T_pad = _round_up(T, LANE)

    # Per-call activation prep (ints only - no table copies here).
    text_col = jnp.zeros((T_pad, 1), jnp.int32).at[:T, 0].set(text)
    ends = jnp.concatenate([offsets[1:], jnp.array([T], dtype=jnp.int32)])
    starts_col = jnp.full((B_pad, 1), T, jnp.int32).at[:B, 0].set(offsets)
    ends_col = jnp.full((B_pad, 1), T, jnp.int32).at[:B, 0].set(ends)

    grid_n = B_pad // tile_b
    cost = pl.CostEstimate(
        flops=2 * B_pad * (T_pad * V_pad + V_pad * D_pad + D_pad * C_pad),
        transcendentals=0,
        bytes_accessed=4 * (grid_n * (V_pad * D_pad + D_pad * C_pad + C_pad + T_pad)
                            + 2 * B_pad + B_pad * C_pad),
    )

    out_padded = pl.pallas_call(
        _embbag_fc_kernel,
        out_shape=jax.ShapeDtypeStruct((B_pad, C_pad), jnp.float32),
        grid=(grid_n,),
        in_specs=[
            pl.BlockSpec((T_pad, 1), lambda g: (0, 0)),        # tokens (resident)
            pl.BlockSpec((tile_b, 1), lambda g: (g, 0)),       # bag starts
            pl.BlockSpec((tile_b, 1), lambda g: (g, 0)),       # bag ends
            pl.BlockSpec((V_pad, D_pad), lambda g: (0, 0)),    # embedding table (resident)
            pl.BlockSpec((D_pad, C_pad), lambda g: (0, 0)),    # fc weight^T (resident)
            pl.BlockSpec((1, C_pad), lambda g: (0, 0)),        # fc bias (resident)
        ],
        out_specs=pl.BlockSpec((tile_b, C_pad), lambda g: (g, 0)),
        compiler_params=pltpu.CompilerParams(
            dimension_semantics=("parallel",),
            vmem_limit_bytes=32 * 1024 * 1024,
        ),
        cost_estimate=cost,
    )(text_col, starts_col, ends_col, emb_pad, w_t, b_pad)

    return out_padded[:B, :C]


def _reference_forward(text, offsets, emb_table, fc_w, fc_b):
    """Plain-JAX reference matching torch EmbeddingBag(mode='mean') + Linear."""
    T = text.shape[0]
    ends = jnp.concatenate([offsets[1:], jnp.array([T], dtype=jnp.int32)])
    rows = emb_table[text]                                    # [T, D]
    outs = []
    for s, e in zip(list(offsets), list(ends)):
        s, e = int(s), int(e)
        if e > s:
            outs.append(jnp.mean(rows[s:e], axis=0))
        else:                                                 # empty bag -> zeros
            outs.append(jnp.zeros((emb_table.shape[1],), emb_table.dtype))
    embedded = jnp.stack(outs, axis=0)                        # [B, D]
    return embedded @ fc_w.T + fc_b                           # [B, C]


if __name__ == "__main__":
    vocab_size = 50
    embed_dim = 128
    num_class = 2

    key = jax.random.PRNGKey(0)
    k_emb, k_fc, k_txt = jax.random.split(key, 3)

    # init_weights(): uniform(-0.5, 0.5) for embedding + fc weight, zero bias
    initrange = 0.5
    emb_table = jax.random.uniform(
        k_emb, (vocab_size, embed_dim), jnp.float32, -initrange, initrange)
    fc_w = jax.random.uniform(
        k_fc, (num_class, embed_dim), jnp.float32, -initrange, initrange)
    fc_b = jnp.zeros((num_class,), jnp.float32)

    # 10 bags (one deliberately empty); 33 tokens total.
    lengths = jnp.array([4, 3, 0, 5, 2, 6, 1, 4, 3, 5], dtype=jnp.int32)
    total = int(lengths.sum())
    offsets = jnp.concatenate(
        [jnp.zeros((1,), jnp.int32), jnp.cumsum(lengths)[:-1].astype(jnp.int32)])
    text = jax.random.randint(k_txt, (total,), 0, vocab_size, jnp.int32)

    params = prepare_params(emb_table, fc_w, fc_b)
    ref = _reference_forward(text, offsets, emb_table, fc_w, fc_b)

    # Default tiling (single bag tile).
    out = jax.block_until_ready(text_classification_forward(text, offsets, params))
    assert out.shape == (offsets.shape[0], num_class)
    assert bool(jnp.allclose(out, ref, atol=1e-5, rtol=1e-5)), (out, ref)

    # Also exercise a multi-step grid (tile_b=8 -> two bag tiles).
    out_tiled = jax.block_until_ready(
        text_classification_forward(text, offsets, params, tile_b=8))
    assert bool(jnp.allclose(out_tiled, ref, atol=1e-5, rtol=1e-5)), (out_tiled, ref)

    print("KERNEL_OK")
</pallas_src>

<mosaic_0001>
module attributes {stable_mosaic.version = 11 : i64} {
  func.func @_embbag_fc_kernel(%arg0: i32, %arg1: memref<128x1xi32, #tpu.memory_space<vmem>>, %arg2: memref<16x1xi32, #tpu.memory_space<vmem>>, %arg3: memref<16x1xi32, #tpu.memory_space<vmem>>, %arg4: memref<128x128xf32, #tpu.memory_space<vmem>>, %arg5: memref<128x128xf32, #tpu.memory_space<vmem>>, %arg6: memref<1x128xf32, #tpu.memory_space<vmem>>, %arg7: memref<16x128xf32, #tpu.memory_space<vmem>>) attributes {dimension_semantics = [#tpu.dimension_semantics<parallel>], iteration_bounds = array<i64: 1>, scalar_prefetch = 0 : i64, scratch_operands = 0 : i64, tpu.core_type = #tpu.core_type<tc>, window_params = [{pipeline_mode = #tpu.pipeline_mode<synchronous>, transform_indices = @transform_0, window_bounds = array<i64: 128, 1>}, {transform_indices = @transform_1, window_bounds = array<i64: 16, 1>}, {transform_indices = @transform_2, window_bounds = array<i64: 16, 1>}, {pipeline_mode = #tpu.pipeline_mode<synchronous>, transform_indices = @transform_3, window_bounds = array<i64: 128, 128>}, {pipeline_mode = #tpu.pipeline_mode<synchronous>, transform_indices = @transform_4, window_bounds = array<i64: 128, 128>}, {pipeline_mode = #tpu.pipeline_mode<synchronous>, transform_indices = @transform_5, window_bounds = array<i64: 1, 128>}, {transform_indices = @transform_6, window_bounds = array<i64: 16, 128>}]} {
    %c0 = arith.constant 0 : index
    %c0_0 = arith.constant 0 : index
    %0 = vector.load %arg2[%c0, %c0_0] : memref<16x1xi32, #tpu.memory_space<vmem>>, vector<16x1xi32>
    %c0_1 = arith.constant 0 : index
    %c0_2 = arith.constant 0 : index
    %1 = vector.load %arg3[%c0_1, %c0_2] : memref<16x1xi32, #tpu.memory_space<vmem>>, vector<16x1xi32>
    %2 = arith.subi %1, %0 : vector<16x1xi32>
    %3 = arith.sitofp %2 : vector<16x1xi32> to vector<16x1xf32>
    %cst = arith.constant 0.000000e+00 : f32
    %4 = vector.broadcast %cst : f32 to vector<16x1xf32>
    %5 = arith.cmpf ogt, %3, %4 : vector<16x1xf32>
    %cst_3 = arith.constant 1.000000e+00 : f32
    %6 = vector.broadcast %cst_3 : f32 to vector<16x1xf32>
    %7 = arith.maximumf %3, %6 : vector<16x1xf32>
    %cst_4 = arith.constant 1.000000e+00 : f32
    %8 = vector.broadcast %cst_4 : f32 to vector<16x1xf32>
    %9 = arith.divf %8, %7 : vector<16x1xf32>
    %cst_5 = arith.constant 0.000000e+00 : f32
    %10 = vector.broadcast %cst_5 : f32 to vector<16x1xf32>
    %11 = arith.select %5, %9, %10 : vector<16x1xi1>, vector<16x1xf32>
    %12 = tpu.iota {dimensions = array<i32: 1>} : vector<16x128xi32>
    %13 = vector.broadcast %0 : vector<16x1xi32> to vector<16x128xi32>
    %14 = arith.cmpi sge, %12, %13 : vector<16x128xi32>
    %15 = vector.broadcast %1 : vector<16x1xi32> to vector<16x128xi32>
    %16 = arith.cmpi slt, %12, %15 : vector<16x128xi32>
    %17 = arith.andi %14, %16 : vector<16x128xi1>
    %cst_6 = arith.constant 0.000000e+00 : f32
    %18 = vector.shape_cast %11 : vector<16x1xf32> to vector<16x1xf32>
    %19 = vector.broadcast %18 : vector<16x1xf32> to vector<16x128xf32>
    %20 = vector.broadcast %cst_6 : f32 to vector<16x128xf32>
    %21 = arith.select %17, %19, %20 : vector<16x128xi1>, vector<16x128xf32>
    %c0_7 = arith.constant 0 : index
    %c0_8 = arith.constant 0 : index
    %22 = vector.load %arg1[%c0_7, %c0_8] : memref<128x1xi32, #tpu.memory_space<vmem>>, vector<128x1xi32>
    %23 = tpu.iota {dimensions = array<i32: 1>} : vector<128x128xi32>
    %24 = vector.broadcast %22 : vector<128x1xi32> to vector<128x128xi32>
    %25 = arith.cmpi eq, %24, %23 : vector<128x128xi32>
    %26 = arith.extui %25 : vector<128x128xi1> to vector<128x128xi32>
    %27 = arith.sitofp %26 : vector<128x128xi32> to vector<128x128xf32>
    %cst_9 = arith.constant dense<0.000000e+00> : vector<16x128xf32>
    %28 = tpu.matmul %21, %27, %cst_9 {dimension_numbers = #tpu.dot_dimension_numbers<[1], [0], [0], [1], [0, 0, 1, 1], [], []>} : vector<16x128xf32>, vector<128x128xf32>, vector<16x128xf32> -> vector<16x128xf32>
    %c0_10 = arith.constant 0 : index
    %c0_11 = arith.constant 0 : index
    %29 = vector.load %arg4[%c0_10, %c0_11] : memref<128x128xf32, #tpu.memory_space<vmem>>, vector<128x128xf32>
    %cst_12 = arith.constant dense<0.000000e+00> : vector<16x128xf32>
    %30 = tpu.matmul %28, %29, %cst_12 {dimension_numbers = #tpu.dot_dimension_numbers<[1], [0], [0], [1], [0, 0, 1, 1], [], []>} : vector<16x128xf32>, vector<128x128xf32>, vector<16x128xf32> -> vector<16x128xf32>
    %c0_13 = arith.constant 0 : index
    %c0_14 = arith.constant 0 : index
    %31 = vector.load %arg5[%c0_13, %c0_14] : memref<128x128xf32, #tpu.memory_space<vmem>>, vector<128x128xf32>
    %cst_15 = arith.constant dense<0.000000e+00> : vector<16x128xf32>
    %32 = tpu.matmul %30, %31, %cst_15 {dimension_numbers = #tpu.dot_dimension_numbers<[1], [0], [0], [1], [0, 0, 1, 1], [], []>} : vector<16x128xf32>, vector<128x128xf32>, vector<16x128xf32> -> vector<16x128xf32>
    %c0_16 = arith.constant 0 : index
    %c0_17 = arith.constant 0 : index
    %33 = vector.load %arg6[%c0_16, %c0_17] : memref<1x128xf32, #tpu.memory_space<vmem>>, vector<1x128xf32>
    %34 = vector.broadcast %33 : vector<1x128xf32> to vector<16x128xf32>
    %35 = arith.addf %32, %34 : vector<16x128xf32>
    %c0_18 = arith.constant 0 : index
    %c0_19 = arith.constant 0 : index
    %36 = vector.load %arg7[%c0_18, %c0_19] : memref<16x128xf32, #tpu.memory_space<vmem>>, vector<16x128xf32>
    tpu.vector_store %arg7[%c0_18, %c0_19], %35 {strides = array<i32>} : memref<16x128xf32, #tpu.memory_space<vmem>>, vector<16x128xf32>,
    return
  }
  func.func @transform_0(%arg0: i32) -> (i32, i32) {
    %c0_i32 = arith.constant 0 : i32
    %c0_i32_0 = arith.constant 0 : i32
    %c0_i32_1 = arith.constant 0 : i32
    return %c0_i32, %c0_i32_0 : i32, i32
  }
  func.func @transform_1(%arg0: i32) -> (i32, i32) {
    %c0_i32 = arith.constant 0 : i32
    %c0_i32_0 = arith.constant 0 : i32
    return %arg0, %c0_i32 : i32, i32
  }
  func.func @transform_2(%arg0: i32) -> (i32, i32) {
    %c0_i32 = arith.constant 0 : i32
    %c0_i32_0 = arith.constant 0 : i32
    return %arg0, %c0_i32 : i32, i32
  }
  func.func @transform_3(%arg0: i32) -> (i32, i32) {
    %c0_i32 = arith.constant 0 : i32
    %c0_i32_0 = arith.constant 0 : i32
    %c0_i32_1 = arith.constant 0 : i32
    return %c0_i32, %c0_i32_0 : i32, i32
  }
  func.func @transform_4(%arg0: i32) -> (i32, i32) {
    %c0_i32 = arith.constant 0 : i32
    %c0_i32_0 = arith.constant 0 : i32
    %c0_i32_1 = arith.constant 0 : i32
    return %c0_i32, %c0_i32_0 : i32, i32
  }
  func.func @transform_5(%arg0: i32) -> (i32, i32) {
    %c0_i32 = arith.constant 0 : i32
    %c0_i32_0 = arith.constant 0 : i32
    %c0_i32_1 = arith.constant 0 : i32
    return %c0_i32, %c0_i32_0 : i32, i32
  }
  func.func @transform_6(%arg0: i32) -> (i32, i32) {
    %c0_i32 = arith.constant 0 : i32
    %c0_i32_0 = arith.constant 0 : i32
    return %arg0, %c0_i32 : i32, i32
  }
}

</mosaic_0001>

<bundles_post_ra>
// kernel: tpu_custom_call.1
= control target key start
LH: loop header
LB: loop body
LE: loop exit
PB: predicated region body
PF: predicated region fallthrough
CT: control target
= control target key end

     0   :  { %11 = vsyncpa [#allocation3], 0  ;;  %s951_s0 = inlined_call_operand.vmem [shape: s32[128,1], index: 0, kind: input, shape index: {}]   ;;  %s952_s1 = inlined_call_operand.vmem [shape: s32[16,1], index: 1, kind: input, shape index: {}]   ;;  %s953_s2 = inlined_call_operand.vmem [shape: s32[16,1], index: 2, kind: input, shape index: {}]   ;;  %s954_s3 = inlined_call_operand.vmem [shape: f32[128,128], index: 3, kind: input, shape index: {}]   ;;  %s955_s4 = inlined_call_operand.hbm [shape: f32[128,128], index: 4, kind: input, shape index: {}]   ;;  %s956_s5 = inlined_call_operand.vmem [shape: f32[1,128], index: 5, kind: input, shape index: {}]   ;;  %s957_s6 = inlined_call_operand.hbm [shape: f32[16,128], index: 6, kind: output, shape index: {}]  }
   0x1   :  { %12 = vsyncpa [#allocation4], 0  ;;  %s733_s21 = smov [#allocation2]  }
   0x2   :  { %s26_s22 = sshll.u32 %s733_s21, 4  ;;  %s27_s22 = int_to_ptr.vmem [resolvable:$true] %s26_s22 }
   0x3   :  { %s697_s23 = scalar_lea.vmem %s27_s22, 2048  ;;  %p702_p1 = scmp.lt.s32.totalorder %s27_s22, %s27_s22 }
   0x4   :  { %p698_p0 = scmp.ne.s32.totalorder %s27_s22, %s697_s23  ;;  %p703_p2 = scmp.lt.s32.totalorder %s697_s23, %s697_s23 }
   0x6   :  { %p704_p3 = por %p703_p2, %p702_p1 }
   0x8   :  { %p705_p4 = pnand %p704_p3, %p698_p0 }
   0xa   :  { %708 = shalt.err (!%p705_p4)
}
   0xb   :  { %s734_s24 = smov 128   ;;  %s735_s25 = smov 8  }
   0xc   :  { %32 = dma.hbm_to_vmem [thread:$0]  %s955_s4, 2048, %s27_s22, [#allocation3], %s734_s24, %s734_s24, %s735_s25  }
   0xd   :  { %729 = dma.done.wait [#allocation3], 2048  }
   0xe   :  { %730 = vsyncadd [#allocation3], 4294965248  ;;  %v736_v0 = vmov 0   ;;  %v103_v1 = vld [vmem:[%s951_s0 + $0x78] sm:$0xff]  ;;  %v101_v2 = vld [vmem:[%s951_s0 + $0x68] sm:$0xff]  ;;  %v56_v45 = vlaneseq  ;;  %v737_v49 = vmov 1.0  }
   0xf   :  { %684 = vset.pattern.permute.xlu1 %v736_v0  ;;  %683 = vset.pattern.permute.xlu0 %v736_v0  ;;  %v102_v3 = vld [vmem:[%s951_s0 + $0x70] sm:$0xff]  ;;  %v100_v4 = vld [vmem:[%s951_s0 + $0x60] sm:$0xff]  ;;  %v99_v5 = vld [vmem:[%s951_s0 + $0x58] sm:$0xff]  ;;  %s738_s26 = smov [#allocation5]  }
  0x10   :  { %150 = vperm.xlu0 %683, %v103_v1   ;;  %144 = vperm.xlu1 %684, %v101_v2   ;;  %v98_v6 = vld [vmem:[%s951_s0 + $0x50] sm:$0xff]  ;;  %v38_v7 = vld [vmem:[%s952_s1] sm:$0xff]  ;;  %v39_v9 = vld [vmem:[%s952_s1 + $0x8] sm:$0xff]  ;;  %v882_v46 = vand.u32 127, %v56_v45  ;;  %s471_s27 = sshll.u32 %s738_s26, 4  ;;  %s472_s27 = int_to_ptr.vmem [resolvable:$true] %s471_s27 }
  0x11   :  { %v40_v8 = vld [vmem:[%s953_s2] sm:$0xff]  ;;  %v41_v10 = vld [vmem:[%s953_s2 + $0x8] sm:$0xff]  ;;  %v95_v16 = vld [vmem:[%s951_s0 + $0x38] sm:$0xff]  ;;  %s709_s28 = scalar_lea.vmem %s472_s27, 256  ;;  %p714_p6 = scmp.lt.s32.totalorder %s472_s27, %s472_s27 }
  0x12   :  { %v42_v11 = vsub.s32 %v40_v8, %v38_v7  ;;  %v97_v12 = vld [vmem:[%s951_s0 + $0x48] sm:$0xff]  ;;  %v96_v13 = vld [vmem:[%s951_s0 + $0x40] sm:$0xff]  ;;  %v43_v14 = vsub.s32 %v41_v10, %v39_v9  ;;  %v94_v17 = vld [vmem:[%s951_s0 + $0x30] sm:$0xff]  ;;  %p710_p5 = scmp.ne.s32.totalorder %s472_s27, %s709_s28  ;;  %p715_p7 = scmp.lt.s32.totalorder %s709_s28, %s709_s28 }
  0x13   :  { %v93_v20 = vld [vmem:[%s951_s0 + $0x28] sm:$0xff]  ;;  %v92_v21 = vld [vmem:[%s951_s0 + $0x20] sm:$0xff]  ;;  %v91_v23 = vld [vmem:[%s951_s0 + $0x18] sm:$0xff] }
  0x14   :  { %147 = vperm.xlu0 %683, %v102_v3   ;;  %141 = vperm.xlu1 %684, %v100_v4   ;;  %v44_v15 = vcvt.s32.f32 %v42_v11  ;;  %v45_v18 = vcvt.s32.f32 %v43_v14  ;;  %v90_v24 = vld [vmem:[%s951_s0 + $0x10] sm:$0xff]  ;;  %v89_v25 = vld [vmem:[%s951_s0 + $0x8] sm:$0xff]  ;;  %v88_v26 = vld [vmem:[%s951_s0] sm:$0xff]  ;;  %p716_p8 = por %p715_p7, %p714_p6 }
  0x15   :  { %v290_v31 = vld [vmem:[%s954_s3 + $0x78] sm:$0xff]  ;;  %v289_v32 = vld [vmem:[%s954_s3 + $0x70] sm:$0xff]  ;;  %v288_v33 = vld [vmem:[%s954_s3 + $0x68] sm:$0xff] }
  0x16   :  { %v48_v19 = vmax.f32 %v44_v15, 1.0  ;;  %v49_v22 = vmax.f32 %v45_v18, 1.0  ;;  %vm47_vm0 = vcmp.gt.f32.partialorder %v45_v18, 0.0  ;;  %vm46_vm1 = vcmp.gt.f32.partialorder %v44_v15, 0.0  ;;  %607 = vmatprep.subr.mxu1 %v290_v31  ;;  %v287_v34 = vld [vmem:[%s954_s3 + $0x60] sm:$0xff]  ;;  %v286_v35 = vld [vmem:[%s954_s3 + $0x58] sm:$0xff]  ;;  %p717_p9 = pnand %p716_p8, %p710_p5 }
  0x17   :  { %608 = vmatpush3.msra.mxu1 %v290_v31  ;;  %v285_v36 = vld [vmem:[%s954_s3 + $0x50] sm:$0xff]  ;;  %v284_v37 = vld [vmem:[%s954_s3 + $0x48] sm:$0xff]  ;;  %v283_v38 = vld [vmem:[%s954_s3 + $0x40] sm:$0xff] }
  0x18   :  { %138 = vperm.xlu0 %683, %v99_v5   ;;  %135 = vperm.xlu1 %684, %v98_v6   ;;  %685 = vrcp.f32 %v48_v19  ;;  %v282_v39 = vld [vmem:[%s954_s3 + $0x38] sm:$0xff]  ;;  %v281_v40 = vld [vmem:[%s954_s3 + $0x30] sm:$0xff]  ;;  %v280_v41 = vld [vmem:[%s954_s3 + $0x28] sm:$0xff] }
  0x19   :  { %687 = vrcp.f32 %v49_v22  ;;  %609 = vmatprep.subr.mxu1 %v289_v32  ;;  %v279_v42 = vld [vmem:[%s954_s3 + $0x20] sm:$0xff]  ;;  %v278_v43 = vld [vmem:[%s954_s3 + $0x18] sm:$0xff]  ;;  %v277_v44 = vld [vmem:[%s954_s3 + $0x10] sm:$0xff] }
  0x1a   :  { %610 = vmatpush3.msra.mxu1 %v289_v32  ;;  %v276_v6 = vld [vmem:[%s954_s3 + $0x8] sm:$0xff]  ;;  %v378_v11 = vld [vmem:[#allocation2 + $0x60] sm:$0xff] }
  0x1b   :  { %611 = vmatprep.subr.mxu1 %v288_v33  ;;  %v375_v14 = vld [vmem:[#allocation2 + $0x48] sm:$0xff]  ;;  %v374_v15 = vld [vmem:[#allocation2 + $0x40] sm:$0xff] }
  0x1c   :  { %132 = vperm.xlu0 %683, %v97_v12   ;;  %129 = vperm.xlu1 %684, %v96_v13   ;;  %v377_v12 = vld [vmem:[#allocation2 + $0x58] sm:$0xff]  ;;  %v376_v13 = vld [vmem:[#allocation2 + $0x50] sm:$0xff]  ;;  %v371_v18 = vld [vmem:[#allocation2 + $0x28] sm:$0xff] }
  0x1d   :  { %612 = vmatpush3.msra.mxu1 %v288_v33  ;;  %v370_v19 = vld [vmem:[#allocation2 + $0x20] sm:$0xff] }
  0x1e   :  { %613 = vmatprep.subr.mxu1 %v287_v34 }
  0x1f   :  { %614 = vmatpush3.msra.mxu1 %v287_v34 }
  0x20   :  { %126 = vperm.xlu0 %683, %v95_v16   ;;  %123 = vperm.xlu1 %684, %v94_v17   ;;  %v373_v16 = vld [vmem:[#allocation2 + $0x38] sm:$0xff]  ;;  %v372_v17 = vld [vmem:[#allocation2 + $0x30] sm:$0xff] }
  0x21   :  { %615 = vmatprep.subr.mxu1 %v286_v35 }
  0x22   :  { %616 = vmatpush3.msra.mxu1 %v286_v35 }
  0x23   :  { %617 = vmatprep.subr.mxu1 %v285_v36 }
  0x24   :  { %120 = vperm.xlu0 %683, %v93_v20   ;;  %117 = vperm.xlu1 %684, %v92_v21   ;;  %v369_v20 = vld [vmem:[#allocation2 + $0x18] sm:$0xff]  ;;  %v368_v21 = vld [vmem:[#allocation2 + $0x10] sm:$0xff] }
  0x25   :  { %v686_v27 = vpop.eup %685  ;;  %618 = vmatpush3.msra.mxu1 %v285_v36 }
  0x26   :  { %v688_v28 = vpop.eup %687  ;;  %v54_v30 = vsel %vm46_vm1, %v686_v27, 0.0  ;;  %619 = vmatprep.subr.mxu1 %v284_v37 }
  0x27   :  { %v55_v29 = vsel %vm47_vm0, %v688_v28, 0.0  ;;  %620 = vmatpush3.msra.mxu1 %v284_v37  ;;  %v517_v28 = vld [vmem:[%s956_s5] ss:$0 sm:$0xff] }
  0x28   :  { %114 = vperm.xlu0 %683, %v91_v23   ;;  %111 = vperm.xlu1 %684, %v90_v24   ;;  %v367_v24 = vld [vmem:[#allocation2 + $0x8] sm:$0xff] }
  0x29   :  { %621 = vmatprep.subr.mxu1 %v283_v38 }
  0x2a   :  { %622 = vmatpush3.msra.mxu1 %v283_v38 }
  0x2b   :  { %623 = vmatprep.subr.mxu1 %v282_v39 }
  0x2c   :  { %108 = vperm.xlu0 %683, %v89_v25   ;;  %59 = vperm.xlu1 %684, %v38_v7   ;;  %v275_v7 = vld [vmem:[%s954_s3] sm:$0xff] }
  0x2d   :  { %624 = vmatpush3.msra.mxu1 %v282_v39  ;;  %v366_v25 = vld [vmem:[#allocation2] sm:$0xff] }
  0x2e   :  { %625 = vmatprep.subr.mxu1 %v281_v40 }
  0x2f   :  { %626 = vmatpush3.msra.mxu1 %v281_v40 }
  0x30   :  { %67 = vperm.xlu0 %683, %v40_v8   ;;  %105 = vperm.xlu1 %684, %v88_v26   ;;  %v381_v8 = vld [vmem:[#allocation2 + $0x78] sm:$0xff] }
  0x31   :  { %627 = vmatprep.subr.mxu1 %v280_v41 }
  0x32   :  { %628 = vmatpush3.msra.mxu1 %v280_v41 }
  0x33   :  { %629 = vmatprep.subr.mxu1 %v279_v42 }
  0x34   :  { %62 = vperm.xlu0 %683, %v39_v9   ;;  %70 = vperm.xlu1 %684, %v41_v10   ;;  %v380_v9 = vld [vmem:[#allocation2 + $0x70] sm:$0xff]  ;;  %v379_v10 = vld [vmem:[#allocation2 + $0x68] sm:$0xff] }
  0x35   :  { %630 = vmatpush3.msra.mxu1 %v279_v42 }
  0x36   :  { %631 = vmatprep.subr.mxu1 %v278_v43 }
  0x37   :  { %632 = vmatpush3.msra.mxu1 %v278_v43 }
  0x38   :  { %83 = vperm.xlu1 %684, %v55_v29   ;;  %78 = vperm.xlu0 %683, %v54_v30  }
  0x39   :  { %633 = vmatprep.subr.mxu1 %v277_v44 }
  0x3a   :  { %634 = vmatpush3.msra.mxu1 %v277_v44 }
  0x3b   :  { %635 = vmatprep.subr.mxu1 %v276_v6 }
  0x3c   :  { %636 = vmatpush3.msra.mxu1 %v276_v6 }
  0x3d   :  { %637 = vmatprep.subr.mxu1 %v275_v7 }
  0x3e   :  { %638 = vmatpush3.msra.mxu1 %v275_v7 }
  0x8b   :  { %v151_v47 = vpop.permute.xlu0 %150  ;;  %v145_v48 = vpop.permute.xlu1 %144 }
  0x8c   :  { %vm167_vm2 = vcmp.eq.s32.totalorder %v151_v47, %v882_v46  ;;  %vm165_vm4 = vcmp.eq.s32.totalorder %v145_v48, %v882_v46 }
  0x8d   :  { %572 = vmatprep.subr.msk.mxu0 %vm167_vm2, %v737_v49 }
  0x8e   :  { %573 = vmatpush3.msk.msra.mxu0 %vm167_vm2, %v737_v49 }
  0x8f   :  { %v148_v50 = vpop.permute.xlu0 %147  ;;  %v142_v51 = vpop.permute.xlu1 %141 }
  0x90   :  { %vm166_vm3 = vcmp.eq.s32.totalorder %v148_v50, %v882_v46  ;;  %vm164_vm5 = vcmp.eq.s32.totalorder %v142_v51, %v882_v46 }
  0x91   :  { %574 = vmatprep.subr.msk.mxu0 %vm166_vm3, %v737_v49 }
  0x92   :  { %575 = vmatpush3.msk.msra.mxu0 %vm166_vm3, %v737_v49 }
  0x93   :  { %576 = vmatprep.subr.msk.mxu0 %vm165_vm4, %v737_v49  ;;  %v139_v52 = vpop.permute.xlu0 %138  ;;  %v136_v53 = vpop.permute.xlu1 %135 }
  0x94   :  { %577 = vmatpush3.msk.msra.mxu0 %vm165_vm4, %v737_v49  ;;  %vm163_vm6 = vcmp.eq.s32.totalorder %v139_v52, %v882_v46  ;;  %vm162_vm7 = vcmp.eq.s32.totalorder %v136_v53, %v882_v46 }
  0x95   :  { %578 = vmatprep.subr.msk.mxu0 %vm164_vm5, %v737_v49 }
  0x96   :  { %579 = vmatpush3.msk.msra.mxu0 %vm164_vm5, %v737_v49 }
  0x97   :  { %580 = vmatprep.subr.msk.mxu0 %vm163_vm6, %v737_v49  ;;  %v133_v54 = vpop.permute.xlu0 %132  ;;  %v130_v55 = vpop.permute.xlu1 %129 }
  0x98   :  { %581 = vmatpush3.msk.msra.mxu0 %vm163_vm6, %v737_v49  ;;  %vm161_vm8 = vcmp.eq.s32.totalorder %v133_v54, %v882_v46  ;;  %vm160_vm9 = vcmp.eq.s32.totalorder %v130_v55, %v882_v46 }
  0x99   :  { %582 = vmatprep.subr.msk.mxu0 %vm162_vm7, %v737_v49 }
  0x9a   :  { %583 = vmatpush3.msk.msra.mxu0 %vm162_vm7, %v737_v49 }
  0x9b   :  { %584 = vmatprep.subr.msk.mxu0 %vm161_vm8, %v737_v49  ;;  %v127_v56 = vpop.permute.xlu0 %126  ;;  %v124_v57 = vpop.permute.xlu1 %123 }
  0x9c   :  { %585 = vmatpush3.msk.msra.mxu0 %vm161_vm8, %v737_v49  ;;  %vm159_vm10 = vcmp.eq.s32.totalorder %v127_v56, %v882_v46  ;;  %vm158_vm11 = vcmp.eq.s32.totalorder %v124_v57, %v882_v46 }
  0x9d   :  { %586 = vmatprep.subr.msk.mxu0 %vm160_vm9, %v737_v49 }
  0x9e   :  { %587 = vmatpush3.msk.msra.mxu0 %vm160_vm9, %v737_v49 }
  0x9f   :  { %588 = vmatprep.subr.msk.mxu0 %vm159_vm10, %v737_v49  ;;  %v121_v58 = vpop.permute.xlu0 %120  ;;  %v118_v59 = vpop.permute.xlu1 %117 }
  0xa0   :  { %589 = vmatpush3.msk.msra.mxu0 %vm159_vm10, %v737_v49  ;;  %vm157_vm12 = vcmp.eq.s32.totalorder %v121_v58, %v882_v46  ;;  %vm156_vm13 = vcmp.eq.s32.totalorder %v118_v59, %v882_v46 }
  0xa1   :  { %590 = vmatprep.subr.msk.mxu0 %vm158_vm11, %v737_v49 }
  0xa2   :  { %591 = vmatpush3.msk.msra.mxu0 %vm158_vm11, %v737_v49 }
  0xa3   :  { %592 = vmatprep.subr.msk.mxu0 %vm157_vm12, %v737_v49  ;;  %v115_v60 = vpop.permute.xlu0 %114  ;;  %v112_v61 = vpop.permute.xlu1 %111 }
  0xa4   :  { %593 = vmatpush3.msk.msra.mxu0 %vm157_vm12, %v737_v49  ;;  %vm155_vm14 = vcmp.eq.s32.totalorder %v115_v60, %v882_v46  ;;  %vm154_vm15 = vcmp.eq.s32.totalorder %v112_v61, %v882_v46 }
  0xa5   :  { %594 = vmatprep.subr.msk.mxu0 %vm156_vm13, %v737_v49 }
  0xa6   :  { %595 = vmatpush3.msk.msra.mxu0 %vm156_vm13, %v737_v49 }
  0xa7   :  { %596 = vmatprep.subr.msk.mxu0 %vm155_vm14, %v737_v49  ;;  %v109_v62 = vpop.permute.xlu0 %108  ;;  %v60_v63 = vpop.permute.xlu1 %59 }
  0xa8   :  { %597 = vmatpush3.msk.msra.mxu0 %vm155_vm14, %v737_v49  ;;  %vm153_vm0 = vcmp.eq.s32.totalorder %v109_v62, %v882_v46  ;;  %vm64_vm5 = vcmp.ge.s32.totalorder %v882_v46, %v60_v63 }
  0xa9   :  { %598 = vmatprep.subr.msk.mxu0 %vm154_vm15, %v737_v49 }
  0xaa   :  { %599 = vmatpush3.msk.msra.mxu0 %vm154_vm15, %v737_v49 }
  0xab   :  { %600 = vmatprep.subr.msk.mxu0 %vm153_vm0, %v737_v49  ;;  %v68_v0 = vpop.permute.xlu0 %67  ;;  %v106_v1 = vpop.permute.xlu1 %105 }
  0xac   :  { %vm152_vm1 = vcmp.eq.s32.totalorder %v106_v1, %v882_v46  ;;  %601 = vmatpush3.msk.msra.mxu0 %vm153_vm0, %v737_v49  ;;  %vm72_vm2 = vcmp.lt.s32.totalorder %v882_v46, %v68_v0 }
  0xad   :  { %602 = vmatprep.subr.msk.mxu0 %vm152_vm1, %v737_v49  ;;  %vm74_vm6 = vmand %vm64_vm5, %vm72_vm2 }
  0xae   :  { %603 = vmatpush3.msk.msra.mxu0 %vm152_vm1, %v737_v49 }
  0xaf   :  { %v63_v2 = vpop.permute.xlu0 %62  ;;  %v71_v3 = vpop.permute.xlu1 %70  ;;  %642 = vmatprep.subr.mxu0 %v381_v8 }
  0xb0   :  { %vm65_vm3 = vcmp.ge.s32.totalorder %v882_v46, %v63_v2  ;;  %vm73_vm4 = vcmp.lt.s32.totalorder %v882_v46, %v71_v3 }
  0xb1   :  { %vm75_vm7 = vmand %vm65_vm3, %vm73_vm4 }
  0xb3   :  { %v84_v4 = vpop.permute.xlu1 %83  ;;  %v79_v5 = vpop.permute.xlu0 %78 }
  0xb4   :  { %604 = vmatprep.mubr.msk.f32.mxu0 %vm74_vm6, %v79_v5 }
  0xb5   :  { %605 = vmatmul.mubr.msk.f32.vlgmr.msra.gmra.mxu0 %vm75_vm7, %v84_v4 }
  0xb6   :  { %643 = vmatpush3.msra.mxu0 %v381_v8 }
  0xb7   :  { %644 = vmatprep.subr.mxu0 %v380_v9 }
  0xb8   :  { %645 = vmatpush3.msra.mxu0 %v380_v9 }
  0xb9   :  { %646 = vmatprep.subr.mxu0 %v379_v10 }
  0xba   :  { %647 = vmatpush3.msra.mxu0 %v379_v10 }
  0xbb   :  { %648 = vmatprep.subr.mxu0 %v378_v11 }
  0xbc   :  { %649 = vmatpush3.msra.mxu0 %v378_v11 }
  0xbd   :  { %650 = vmatprep.subr.mxu0 %v377_v12 }
  0xbe   :  { %651 = vmatpush3.msra.mxu0 %v377_v12 }
  0xbf   :  { %652 = vmatprep.subr.mxu0 %v376_v13 }
  0xc0   :  { %653 = vmatpush3.msra.mxu0 %v376_v13 }
  0xc1   :  { %654 = vmatprep.subr.mxu0 %v375_v14 }
  0xc2   :  { %655 = vmatpush3.msra.mxu0 %v375_v14 }
  0xc3   :  { %656 = vmatprep.subr.mxu0 %v374_v15 }
  0xc4   :  { %657 = vmatpush3.msra.mxu0 %v374_v15 }
  0xc5   :  { %658 = vmatprep.subr.mxu0 %v373_v16 }
  0xc6   :  { %659 = vmatpush3.msra.mxu0 %v373_v16 }
  0xc7   :  { %660 = vmatprep.subr.mxu0 %v372_v17 }
  0xc8   :  { %661 = vmatpush3.msra.mxu0 %v372_v17 }
  0xc9   :  { %662 = vmatprep.subr.mxu0 %v371_v18 }
  0xca   :  { %663 = vmatpush3.msra.mxu0 %v371_v18 }
  0xcb   :  { %664 = vmatprep.subr.mxu0 %v370_v19 }
  0xcc   :  { %665 = vmatpush3.msra.mxu0 %v370_v19 }
  0xcd   :  { %666 = vmatprep.subr.mxu0 %v369_v20 }
  0xce   :  { %667 = vmatpush3.msra.mxu0 %v369_v20 }
  0xcf   :  { %668 = vmatprep.subr.mxu0 %v368_v21 }
  0xd0   :  { %669 = vmatpush3.msra.mxu0 %v368_v21 }
  0xd1   :  { %670 = vmatprep.subr.mxu0 %v367_v24 }
  0xd2   :  { %671 = vmatpush3.msra.mxu0 %v367_v24 }
  0xd3   :  { %672 = vmatprep.subr.mxu0 %v366_v25 }
  0xd4   :  { %673 = vmatpush3.msra.mxu0 %v366_v25 }
 0x175   :  { %v606_v22 = vpop.f32.mrf.mxu0 }
 0x177   :  { %v266_v23 = vpop.f32.mrf.mxu0 }
 0x178   :  { %639 = vmatprep.mubr.f32.mxu1 %v266_v23 }
 0x179   :  { %640 = vmatmul.mubr.f32.vlgmr.msra.gmra.mxu1 %v606_v22 }
 0x239   :  { %v641_v26 = vpop.f32.mrf.mxu1 }
 0x23b   :  { %v357_v27 = vpop.f32.mrf.mxu1 }
 0x23c   :  { %674 = vmatprep.mubr.f32.mxu0 %v357_v27 }
 0x23d   :  { %675 = vmatmul.mubr.f32.vlgmr.msra.gmra.mxu0 %v641_v26 }
 0x2fd   :  { %v676_v29 = vpop.f32.mrf.mxu0 }
 0x2fe   :  { %v461_v30 = vadd.f32 %v676_v29, %v517_v28 }
 0x2ff   :  { %v455_v31 = vpop.f32.mrf.mxu0 }
 0x300   :  { %465 = vst [vmem:[#allocation5 + $0x8] sm:$0xff] %v461_v30  ;;  %v456_v32 = vadd.f32 %v517_v28, %v455_v31 }
 0x302   :  { %464 = vst [vmem:[#allocation5] sm:$0xff] %v456_v32 }
 0x303   :  { %720 = shalt.err (!%p717_p9)
}
 0x304   :  { %477 = dma.vmem_to_hbm [thread:$0]  %s472_s27, 256, %s957_s6, [#allocation4], %s734_s24, %s734_s24, %s735_s25  }
 0x305   :  { %731 = dma.done.wait [#allocation4], 256  }
 0x306   :  { %732 = vsyncadd [#allocation4], 4294967040 }
 0x307   :  { %481 = vsyncpa [#allocation3], 1 }
 0x308   :  { %482 = vsyncpa [#allocation4], 1 }

</bundles_post_ra>
